<compile_context>
chip_gen: v6e
topology: v6e:2x2x1
jax: 0.10.0
libtpu: 0.0.40
codegen_flags: <defaults>
</compile_context>

<pallas_src>
import jax
import jax.numpy as jnp
from jax import lax
from jax.experimental import pallas as pl
from jax.experimental.pallas import tpu as pltpu

DROPOUT_P = 0.5
NUM_CLASSES = 5
# drop an element when its uniform uint32 bits fall below p * 2^32
_DROP_THRESHOLD = min(int(DROPOUT_P * (1 << 32)), (1 << 32) - 1)


def _round_up(a, m):
    return ((a + m - 1) // m) * m


def _uniform_bits(shape, seed_u32, tile_u32):
    """Counter-based hash PRNG (murmur3 fmix32 finalizer). Portable & deterministic."""
    rows = lax.broadcasted_iota(jnp.int32, shape, 0).astype(jnp.uint32)
    cols = lax.broadcasted_iota(jnp.int32, shape, 1).astype(jnp.uint32)
    x = (rows * jnp.uint32(0x9E3779B1)) ^ (cols * jnp.uint32(0x85EBCA77))
    x = x + seed_u32 * jnp.uint32(0x27D4EB2F) + tile_u32 * jnp.uint32(0x165667B1)
    x = x ^ (x >> 16)
    x = x * jnp.uint32(0x85EBCA6B)
    x = x ^ (x >> 13)
    x = x * jnp.uint32(0xC2B2AE35)
    x = x ^ (x >> 16)
    return x


def _linear_classifier_kernel(seed_ref,                       # scalar-prefetch (SMEM)
                              x_ref, w0_ref, b0_ref,
                              w1_ref, b1_ref,
                              w2_ref, b2_ref,
                              o_ref):
    # linear0 + relu   (bf16 operands on the MXU, f32 accumulation)
    h0 = jnp.dot(x_ref[...], w0_ref[...], preferred_element_type=jnp.float32)
    h0 = jnp.maximum(h0 + b0_ref[...], 0.0)                   # (TB, mid) f32

    # linear1
    h1 = jnp.dot(h0.astype(jnp.bfloat16), w1_ref[...],
                 preferred_element_type=jnp.float32)
    h1 = h1 + b1_ref[...]                                     # (TB, mid//2) f32

    # dropout(p=0.5) then relu (same order as F.relu(F.dropout(...)))
    # TODO(synk): exact torch RNG stream is not reproducible; mask is deterministic
    # given (seed, batch-tile) via a counter hash instead.
    seed = seed_ref[0].astype(jnp.uint32)
    tile = pl.program_id(0).astype(jnp.uint32)
    bits = _uniform_bits(h1.shape, seed, tile)
    keep = bits >= jnp.uint32(_DROP_THRESHOLD)
    h1 = jnp.where(keep, h1 * (1.0 / (1.0 - DROPOUT_P)), 0.0)
    h1 = jnp.maximum(h1, 0.0)

    # classify + relu
    z = jnp.dot(h1.astype(jnp.bfloat16), w2_ref[...],
                preferred_element_type=jnp.float32)
    z = jnp.maximum(z + b2_ref[...], 0.0)                     # (TB, 5)

    # softmax over the class axis (PyTorch dim=1)
    m = jnp.max(z, axis=-1, keepdims=True)
    e = jnp.exp(z - m)
    o_ref[...] = e / jnp.sum(e, axis=-1, keepdims=True)


def linear_classifier_forward(x, params, seed, *, tile_b=None):
    """x: (B, inSize) f32. params: dict of W0,b0,W1,b1,W2,b2 (f32). seed: int32 (1,)."""
    # bf16 matmul operands (MXU-native, halves x HBM traffic); biases stay f32.
    w0 = params["W0"].astype(jnp.bfloat16)
    w1 = params["W1"].astype(jnp.bfloat16)
    w2 = params["W2"].astype(jnp.bfloat16)
    b0 = params["b0"].astype(jnp.float32)
    b1 = params["b1"].astype(jnp.float32)
    b2 = params["b2"].astype(jnp.float32)

    B, in_size = x.shape
    if tile_b is None:
        # Conservative batch tile: fits comfortably under the default scoped-VMEM
        # limits of v5e (16 MiB) / v6e (32 MiB) / v7x (32 MiB of 64 MiB physical)
        # for reasonable in_size, while being big enough to hide per-step overhead.
        tile_b = min(256, _round_up(B, 16))
    b_pad = _round_up(B, tile_b)

    x_p = x.astype(jnp.bfloat16)
    if b_pad != B:
        x_p = jnp.pad(x_p, ((0, b_pad - B), (0, 0)))

    const2d = lambda shp: pl.BlockSpec(shp, lambda i, s: (0, 0))

    out = pl.pallas_call(
        _linear_classifier_kernel,
        out_shape=jax.ShapeDtypeStruct((b_pad, NUM_CLASSES), jnp.float32),
        grid_spec=pltpu.PrefetchScalarGridSpec(
            num_scalar_prefetch=1,
            grid=(b_pad // tile_b,),
            in_specs=[
                pl.BlockSpec((tile_b, in_size), lambda i, s: (i, 0)),  # x: streamed
                const2d(w0.shape), const2d(b0.shape),                  # weights: resident
                const2d(w1.shape), const2d(b1.shape),
                const2d(w2.shape), const2d(b2.shape),
            ],
            out_specs=pl.BlockSpec((tile_b, NUM_CLASSES), lambda i, s: (i, 0)),
        ),
        compiler_params=pltpu.CompilerParams(
            dimension_semantics=("parallel",)),   # shard batch tiles across TCs (v7x)
    )(seed, x_p, w0, b0, w1, b1, w2, b2)

    return out[:B]


def init_params(key, in_size, mid_size):
    """Deterministic init matching nn.Linear's U(-1/sqrt(fan_in), 1/sqrt(fan_in))."""
    half = mid_size // 2
    ks = jax.random.split(key, 6)

    def linear(kw, kb, fan_in, fan_out):
        bound = 1.0 / jnp.sqrt(float(fan_in))
        w = jax.random.uniform(kw, (fan_in, fan_out), jnp.float32, -bound, bound)
        b = jax.random.uniform(kb, (1, fan_out), jnp.float32, -bound, bound)
        return w, b

    W0, b0 = linear(ks[0], ks[1], in_size, mid_size)
    W1, b1 = linear(ks[2], ks[3], mid_size, half)
    W2, b2 = linear(ks[4], ks[5], half, NUM_CLASSES)
    return {"W0": W0, "b0": b0, "W1": W1, "b1": b1, "W2": W2, "b2": b2}


if __name__ == "__main__":
    IN_SIZE, MID_SIZE, BATCH = 32, 16, 8

    key = jax.random.PRNGKey(0)
    k_x, k_p = jax.random.split(key)
    x = jax.random.normal(k_x, (BATCH, IN_SIZE), dtype=jnp.float32)
    params = init_params(k_p, IN_SIZE, MID_SIZE)
    seed = jnp.array([1234], dtype=jnp.int32)

    out = linear_classifier_forward(x, params, seed)
    out = jax.block_until_ready(out)

    assert out.shape == (BATCH, NUM_CLASSES)
    # rows are valid probability distributions
    assert bool(jnp.all(jnp.isfinite(out)))
    assert bool(jnp.all(out >= 0.0))
    assert bool(jnp.allclose(jnp.sum(out, axis=1), 1.0, atol=1e-5))

    print("KERNEL_OK")
</pallas_src>

<mosaic_0001>
module attributes {stable_mosaic.version = 11 : i64} {
  func.func @_linear_classifier_kernel(%arg0: i32, %arg1: memref<1xi32, #tpu.memory_space<smem>>, %arg2: memref<16x32xbf16, #tpu.memory_space<vmem>>, %arg3: memref<32x16xbf16, #tpu.memory_space<vmem>>, %arg4: memref<1x16xf32, #tpu.memory_space<vmem>>, %arg5: memref<16x8xbf16, #tpu.memory_space<vmem>>, %arg6: memref<1x8xf32, #tpu.memory_space<vmem>>, %arg7: memref<8x5xbf16, #tpu.memory_space<vmem>>, %arg8: memref<1x5xf32, #tpu.memory_space<vmem>>, %arg9: memref<16x5xf32, #tpu.memory_space<vmem>>) attributes {dimension_semantics = [#tpu.dimension_semantics<parallel>], iteration_bounds = array<i64: 1>, scalar_prefetch = 1 : i64, scratch_operands = 0 : i64, tpu.core_type = #tpu.core_type<tc>, window_params = [{transform_indices = @transform_0, window_bounds = array<i64: 16, 32>}, {pipeline_mode = #tpu.pipeline_mode<synchronous>, transform_indices = @transform_1, window_bounds = array<i64: 32, 16>}, {pipeline_mode = #tpu.pipeline_mode<synchronous>, transform_indices = @transform_2, window_bounds = array<i64: 1, 16>}, {pipeline_mode = #tpu.pipeline_mode<synchronous>, transform_indices = @transform_3, window_bounds = array<i64: 16, 8>}, {pipeline_mode = #tpu.pipeline_mode<synchronous>, transform_indices = @transform_4, window_bounds = array<i64: 1, 8>}, {pipeline_mode = #tpu.pipeline_mode<synchronous>, transform_indices = @transform_5, window_bounds = array<i64: 8, 5>}, {pipeline_mode = #tpu.pipeline_mode<synchronous>, transform_indices = @transform_6, window_bounds = array<i64: 1, 5>}, {transform_indices = @transform_7, window_bounds = array<i64: 16, 5>}]} {
    %c0 = arith.constant 0 : index
    %c0_0 = arith.constant 0 : index
    %0 = vector.load %arg2[%c0, %c0_0] : memref<16x32xbf16, #tpu.memory_space<vmem>>, vector<16x32xbf16>
    %c0_1 = arith.constant 0 : index
    %c0_2 = arith.constant 0 : index
    %1 = vector.load %arg3[%c0_1, %c0_2] : memref<32x16xbf16, #tpu.memory_space<vmem>>, vector<32x16xbf16>
    %cst = arith.constant dense<0.000000e+00> : vector<16x16xf32>
    %2 = tpu.matmul %0, %1, %cst {dimension_numbers = #tpu.dot_dimension_numbers<[1], [0], [0], [1], [0, 0, 1, 1], [], []>} : vector<16x32xbf16>, vector<32x16xbf16>, vector<16x16xf32> -> vector<16x16xf32>
    %c0_3 = arith.constant 0 : index
    %c0_4 = arith.constant 0 : index
    %3 = vector.load %arg4[%c0_3, %c0_4] : memref<1x16xf32, #tpu.memory_space<vmem>>, vector<1x16xf32>
    %4 = vector.broadcast %3 : vector<1x16xf32> to vector<16x16xf32>
    %5 = arith.addf %2, %4 : vector<16x16xf32>
    %cst_5 = arith.constant 0.000000e+00 : f32
    %6 = vector.broadcast %cst_5 : f32 to vector<16x16xf32>
    %7 = arith.maximumf %5, %6 : vector<16x16xf32>
    %8 = arith.truncf %7 : vector<16x16xf32> to vector<16x16xbf16>
    %c0_6 = arith.constant 0 : index
    %c0_7 = arith.constant 0 : index
    %9 = vector.load %arg5[%c0_6, %c0_7] : memref<16x8xbf16, #tpu.memory_space<vmem>>, vector<16x8xbf16>
    %cst_8 = arith.constant dense<0.000000e+00> : vector<16x8xf32>
    %10 = tpu.matmul %8, %9, %cst_8 {dimension_numbers = #tpu.dot_dimension_numbers<[1], [0], [0], [1], [0, 0, 1, 1], [], []>} : vector<16x16xbf16>, vector<16x8xbf16>, vector<16x8xf32> -> vector<16x8xf32>
    %c0_9 = arith.constant 0 : index
    %c0_10 = arith.constant 0 : index
    %11 = vector.load %arg6[%c0_9, %c0_10] : memref<1x8xf32, #tpu.memory_space<vmem>>, vector<1x8xf32>
    %12 = vector.broadcast %11 : vector<1x8xf32> to vector<16x8xf32>
    %13 = arith.addf %10, %12 : vector<16x8xf32>
    %c0_11 = arith.constant 0 : index
    %14 = memref.load %arg1[%c0_11] : memref<1xi32, #tpu.memory_space<smem>>
    %15 = tpu.iota {dimensions = array<i32: 0>} : vector<16x8xi32>
    %16 = tpu.iota {dimensions = array<i32: 1>} : vector<16x8xi32>
    %c-1640531535_i32 = arith.constant -1640531535 : i32
    %17 = vector.broadcast %c-1640531535_i32 : i32 to vector<16x8xi32>
    %18 = arith.muli %15, %17 : vector<16x8xi32>
    %c-2048144777_i32 = arith.constant -2048144777 : i32
    %19 = vector.broadcast %c-2048144777_i32 : i32 to vector<16x8xi32>
    %20 = arith.muli %16, %19 : vector<16x8xi32>
    %21 = arith.xori %18, %20 : vector<16x8xi32>
    %c668265263_i32 = arith.constant 668265263 : i32
    %22 = arith.muli %14, %c668265263_i32 : i32
    %23 = vector.broadcast %22 : i32 to vector<16x8xi32>
    %24 = arith.addi %21, %23 : vector<16x8xi32>
    %c374761393_i32 = arith.constant 374761393 : i32
    %25 = arith.muli %arg0, %c374761393_i32 : i32
    %26 = vector.broadcast %25 : i32 to vector<16x8xi32>
    %27 = arith.addi %24, %26 : vector<16x8xi32>
    %c16_i32 = arith.constant 16 : i32
    %28 = vector.broadcast %c16_i32 : i32 to vector<16x8xi32>
    %29 = arith.shrui %27, %28 : vector<16x8xi32>
    %30 = arith.xori %27, %29 : vector<16x8xi32>
    %c-2048144789_i32 = arith.constant -2048144789 : i32
    %31 = vector.broadcast %c-2048144789_i32 : i32 to vector<16x8xi32>
    %32 = arith.muli %30, %31 : vector<16x8xi32>
    %c13_i32 = arith.constant 13 : i32
    %33 = vector.broadcast %c13_i32 : i32 to vector<16x8xi32>
    %34 = arith.shrui %32, %33 : vector<16x8xi32>
    %35 = arith.xori %32, %34 : vector<16x8xi32>
    %c-1028477387_i32 = arith.constant -1028477387 : i32
    %36 = vector.broadcast %c-1028477387_i32 : i32 to vector<16x8xi32>
    %37 = arith.muli %35, %36 : vector<16x8xi32>
    %c16_i32_12 = arith.constant 16 : i32
    %38 = vector.broadcast %c16_i32_12 : i32 to vector<16x8xi32>
    %39 = arith.shrui %37, %38 : vector<16x8xi32>
    %40 = arith.xori %37, %39 : vector<16x8xi32>
    %c-2147483648_i32 = arith.constant -2147483648 : i32
    %41 = vector.broadcast %c-2147483648_i32 : i32 to vector<16x8xi32>
    %42 = arith.cmpi uge, %40, %41 : vector<16x8xi32>
    %cst_13 = arith.constant 2.000000e+00 : f32
    %43 = vector.broadcast %cst_13 : f32 to vector<16x8xf32>
    %44 = arith.mulf %13, %43 : vector<16x8xf32>
    %cst_14 = arith.constant 0.000000e+00 : f32
    %45 = vector.broadcast %cst_14 : f32 to vector<16x8xf32>
    %46 = arith.select %42, %44, %45 : vector<16x8xi1>, vector<16x8xf32>
    %cst_15 = arith.constant 0.000000e+00 : f32
    %47 = vector.broadcast %cst_15 : f32 to vector<16x8xf32>
    %48 = arith.maximumf %46, %47 : vector<16x8xf32>
    %49 = arith.truncf %48 : vector<16x8xf32> to vector<16x8xbf16>
    %c0_16 = arith.constant 0 : index
    %c0_17 = arith.constant 0 : index
    %50 = vector.load %arg7[%c0_16, %c0_17] : memref<8x5xbf16, #tpu.memory_space<vmem>>, vector<8x5xbf16>
    %cst_18 = arith.constant dense<0.000000e+00> : vector<16x5xf32>
    %51 = tpu.matmul %49, %50, %cst_18 {dimension_numbers = #tpu.dot_dimension_numbers<[1], [0], [0], [1], [0, 0, 1, 1], [], []>} : vector<16x8xbf16>, vector<8x5xbf16>, vector<16x5xf32> -> vector<16x5xf32>
    %c0_19 = arith.constant 0 : index
    %c0_20 = arith.constant 0 : index
    %52 = vector.load %arg8[%c0_19, %c0_20] : memref<1x5xf32, #tpu.memory_space<vmem>>, vector<1x5xf32>
    %53 = vector.broadcast %52 : vector<1x5xf32> to vector<16x5xf32>
    %54 = arith.addf %51, %53 : vector<16x5xf32>
    %cst_21 = arith.constant 0.000000e+00 : f32
    %55 = vector.broadcast %cst_21 : f32 to vector<16x5xf32>
    %56 = arith.maximumf %54, %55 : vector<16x5xf32>
    %cst_22 = arith.constant dense<0xFF800000> : vector<16xf32>
    %57 = vector.multi_reduction <maximumf>, %56, %cst_22 [1] : vector<16x5xf32> to vector<16xf32>
    %58 = vector.shape_cast %57 : vector<16xf32> to vector<16x1xf32>
    %59 = vector.broadcast %58 : vector<16x1xf32> to vector<16x5xf32>
    %60 = arith.subf %56, %59 : vector<16x5xf32>
    %61 = math.exp %60 : vector<16x5xf32>
    %cst_23 = arith.constant dense<0.000000e+00> : vector<16xf32>
    %62 = vector.multi_reduction <add>, %61, %cst_23 [1] : vector<16x5xf32> to vector<16xf32>
    %63 = vector.shape_cast %62 : vector<16xf32> to vector<16x1xf32>
    %64 = vector.broadcast %63 : vector<16x1xf32> to vector<16x5xf32>
    %65 = arith.divf %61, %64 : vector<16x5xf32>
    %c0_24 = arith.constant 0 : index
    %c0_25 = arith.constant 0 : index
    %66 = vector.load %arg9[%c0_24, %c0_25] : memref<16x5xf32, #tpu.memory_space<vmem>>, vector<16x5xf32>
    tpu.vector_store %arg9[%c0_24, %c0_25], %65 {strides = array<i32>} : memref<16x5xf32, #tpu.memory_space<vmem>>, vector<16x5xf32>,
    return
  }
  func.func @transform_0(%arg0: i32, %arg1: memref<1xi32, #tpu.memory_space<smem>>) -> (i32, i32) {
    %c0_i32 = arith.constant 0 : i32
    %c0_i32_0 = arith.constant 0 : i32
    return %arg0, %c0_i32 : i32, i32
  }
  func.func @transform_1(%arg0: i32, %arg1: memref<1xi32, #tpu.memory_space<smem>>) -> (i32, i32) {
    %c0_i32 = arith.constant 0 : i32
    %c0_i32_0 = arith.constant 0 : i32
    %c0_i32_1 = arith.constant 0 : i32
    return %c0_i32, %c0_i32_0 : i32, i32
  }
  func.func @transform_2(%arg0: i32, %arg1: memref<1xi32, #tpu.memory_space<smem>>) -> (i32, i32) {
    %c0_i32 = arith.constant 0 : i32
    %c0_i32_0 = arith.constant 0 : i32
    %c0_i32_1 = arith.constant 0 : i32
    return %c0_i32, %c0_i32_0 : i32, i32
  }
  func.func @transform_3(%arg0: i32, %arg1: memref<1xi32, #tpu.memory_space<smem>>) -> (i32, i32) {
    %c0_i32 = arith.constant 0 : i32
    %c0_i32_0 = arith.constant 0 : i32
    %c0_i32_1 = arith.constant 0 : i32
    return %c0_i32, %c0_i32_0 : i32, i32
  }
  func.func @transform_4(%arg0: i32, %arg1: memref<1xi32, #tpu.memory_space<smem>>) -> (i32, i32) {
    %c0_i32 = arith.constant 0 : i32
    %c0_i32_0 = arith.constant 0 : i32
    %c0_i32_1 = arith.constant 0 : i32
    return %c0_i32, %c0_i32_0 : i32, i32
  }
  func.func @transform_5(%arg0: i32, %arg1: memref<1xi32, #tpu.memory_space<smem>>) -> (i32, i32) {
    %c0_i32 = arith.constant 0 : i32
    %c0_i32_0 = arith.constant 0 : i32
    %c0_i32_1 = arith.constant 0 : i32
    return %c0_i32, %c0_i32_0 : i32, i32
  }
  func.func @transform_6(%arg0: i32, %arg1: memref<1xi32, #tpu.memory_space<smem>>) -> (i32, i32) {
    %c0_i32 = arith.constant 0 : i32
    %c0_i32_0 = arith.constant 0 : i32
    %c0_i32_1 = arith.constant 0 : i32
    return %c0_i32, %c0_i32_0 : i32, i32
  }
  func.func @transform_7(%arg0: i32, %arg1: memref<1xi32, #tpu.memory_space<smem>>) -> (i32, i32) {
    %c0_i32 = arith.constant 0 : i32
    %c0_i32_0 = arith.constant 0 : i32
    return %arg0, %c0_i32 : i32, i32
  }
}

</mosaic_0001>

<bundles_post_ra>
// kernel: tpu_custom_call.1
= control target key start
LH: loop header
LB: loop body
LE: loop exit
PB: predicated region body
PF: predicated region fallthrough
CT: control target
= control target key end

     0   :  { %v350_v0 = vmov 0.0   ;;  %vm351_vm0 = vmmov 0   ;;  %vm59_vm1 = vcmask 261120   ;;  %vm122_vm2 = vcmask 130048   ;;  %s439_s2 = inlined_call_operand.vmem [shape: bf16[32,16], index: 2, kind: input, shape index: {}]   ;;  %s440_s1 = inlined_call_operand.vmem [shape: bf16[16,32], index: 1, kind: input, shape index: {}]   ;;  %s441_s4 = inlined_call_operand.vmem [shape: bf16[16,8], index: 4, kind: input, shape index: {}]   ;;  %s442_s3 = inlined_call_operand.vmem [shape: f32[1,16], index: 3, kind: input, shape index: {}]   ;;  %s443_s6 = inlined_call_operand.vmem [shape: bf16[8,5], index: 6, kind: input, shape index: {}]   ;;  %s444_s0 = inlined_call_operand.<no memory space> [shape: s32[1], index: 0, kind: input, shape index: {}]   ;;  %s445_s5 = inlined_call_operand.vmem [shape: f32[1,8], index: 5, kind: input, shape index: {}]   ;;  %s446_s7 = inlined_call_operand.vmem [shape: f32[1,5], index: 7, kind: input, shape index: {}]   ;;  %s447_s8 = inlined_call_operand.vmem [shape: f32[16,5], index: 8, kind: output, shape index: {}]  }
   0x1   :  { %316 = vmatprep.subr.bf16.mxu0 %v350_v0  ;;  %v338_v1 = vld [vmem:[%s439_s2 + $0x8] sm:$0xff]   ;;  %320 = vmatprep.mubr.msk.bf16.mxu0 %vm351_vm0, %v350_v0  ;;  %v339_v2 = vld [vmem:[%s439_s2] sm:$0xff]   ;;  %vm223_vm3 = vcmask 1043456   ;;  %v168_v17 = vlaneseq  ;;  %s178_s15 = smul.u32 668265263, %s444_s0  ;;  %vm219_vm6 = vcmask 64512  }
   0x2   :  { %324 = vmatprep.subr.bf16.mxu1 %v350_v0  ;;  %326 = vmatprep.mubr.msk.bf16.mxu1 %vm351_vm0, %v350_v0  ;;  %v340_v3 = vld [vmem:[%s440_s1] sm:$0xff]   ;;  %vm270_vm7 = vcmask 39936  }
   0x3   :  { %317 = vmatpush3.bf16.msra.mxu0 %v338_v1  ;;  %v341_v4 = vld [vmem:[%s441_s4] sm:$0xff]   ;;  %v169_v18 = vshrl.u32 %v168_v17, 7  ;;  %v172_v19 = vand.u32 127, %v168_v17  ;;  %v179_v25 = vstv %s178_s15 }
   0x4   :  { %318 = vmatprep.subr.bf16.mxu0 %v350_v0  ;;  %325 = vmatpush3.bf16.msra.mxu1 %v341_v4  ;;  %v299_v5 = vld [vmem:[%s442_s3] ss:$0 sm:$0xff] }
   0x5   :  { %330 = vmatprep.subr.bf16.mxu1 %v350_v0  ;;  %v211_v15 = vld [vmem:[%s443_s6] sm:$0xf]  ;;  %v170_v20 = vadd.s32 8, %v169_v18  ;;  %v173_v21 = vmul.u32 2654435761, %v169_v18 }
   0x6   :  { %v225_v16 = vsel %vm223_vm3, %v211_v15, 0  ;;  %v175_v22 = vmul.u32 2246822519, %v172_v19  ;;  %v304_v42 = vld [vmem:[%s445_s5] ss:$0 sm:$0xff] }
   0x7   :  { %319 = vmatpush3.bf16.msra.mxu0 %v339_v2  ;;  %v174_v23 = vmul.u32 2654435761, %v170_v20  ;;  %v307_v59 = vld [vmem:[%s446_s7] ss:$0 sm:$0xff] }
   0x8   :  { %v176_v24 = vxor.u32 %v175_v22, %v173_v21 }
   0x9   :  { %v177_v26 = vxor.u32 %v175_v22, %v174_v23 }
   0xa   :  { %321 = vmatmul.mubr.msk.bf16.vlgmr.msra.gmra.mxu0 %vm59_vm1, %v340_v3  ;;  %v180_v27 = vadd.s32 %v179_v25, %v176_v24 }
   0xb   :  { %v181_v28 = vadd.s32 %v179_v25, %v177_v26 }
   0xc   :  { %v186_v29 = vshrl.u32 %v180_v27, 16 }
   0xd   :  { %v187_v30 = vshrl.u32 %v181_v28, 16 }
   0xe   :  { %v188_v31 = vxor.u32 %v186_v29, %v180_v27 }
   0xf   :  { %v189_v32 = vxor.u32 %v187_v30, %v181_v28 }
  0x10   :  { %v190_v33 = vmul.u32 2246822507, %v188_v31 }
  0x11   :  { %v191_v34 = vmul.u32 2246822507, %v189_v32 }
  0x12   :  { %v192_v35 = vshrl.u32 %v190_v33, 13 }
  0x13   :  { %v193_v36 = vshrl.u32 %v191_v34, 13 }
  0x14   :  { %v194_v37 = vxor.u32 %v192_v35, %v190_v33 }
  0x15   :  { %v195_v38 = vxor.u32 %v193_v36, %v191_v34 }
  0x16   :  { %v196_v39 = vmul.u32 3266489909, %v194_v37 }
  0x17   :  { %v197_v40 = vmul.u32 3266489909, %v195_v38 }
  0x18   :  { %v198_v41 = vshrl.u32 %v196_v39, 16 }
  0x19   :  { %v199_v43 = vshrl.u32 %v197_v40, 16 }
  0x1a   :  { %v200_v45 = vxor.u32 %v198_v41, %v196_v39 }
  0x1b   :  { %v201_v48 = vxor.u32 %v199_v43, %v197_v40 }
  0x1c   :  { %vm202_vm4 = vcmp.ge.u32.totalorder %v200_v45, 2147483648 }
  0x1d   :  { %vm203_vm5 = vcmp.ge.u32.totalorder %v201_v48, 2147483648 }
  0xca   :  { %v97_v6 = vpop.f32.mrf.mxu0 }
  0xcb   :  { %v98_v8 = vadd.f32 %v299_v5, %v97_v6 }
  0xcc   :  { %v322_v7 = vpop.f32.mrf.mxu0 }
  0xcd   :  { %v104_v12 = vmax.f32 %v98_v8, 0.0 }
  0xce   :  { %v100_v9 = vpop.f32.mrf.mxu0 }
  0xcf   :  { %v101_v10 = vadd.f32 %v299_v5, %v100_v9 }
  0xd0   :  { %v323_v11 = vpop.f32.mrf.mxu0 }
  0xd1   :  { %v105_v13 = vmax.f32 %v101_v10, 0.0 }
  0xd3   :  { %v106_v14 = vpack.c.bf16 %v105_v13, %v104_v12 }
  0xd5   :  { %327 = vmatmul.mubr.msk.bf16.vlgmr.msra.gmra.mxu1 %vm122_vm2, %v106_v14 }
  0xd6   :  { %332 = vmatprep.mubr.msk.bf16.mxu1 %vm351_vm0, %v350_v0  ;;  %331 = vmatpush3.bf16.msra.mxu1 %v225_v16 }
 0x195   :  { %v160_v44 = vpop.f32.mrf.mxu1 }
 0x196   :  { %v161_v46 = vadd.f32 %v304_v42, %v160_v44 }
 0x197   :  { %v328_v47 = vpop.f32.mrf.mxu1 }
 0x198   :  { %v204_v49 = vmul.f32 2.0, %v161_v46 }
 0x199   :  { %v163_v50 = vpop.f32.mrf.mxu1 }
 0x19a   :  { %v164_v51 = vadd.f32 %v304_v42, %v163_v50  ;;  %v206_v53 = vsel %vm202_vm4, %v204_v49, 0.0 }
 0x19b   :  { %v329_v52 = vpop.f32.mrf.mxu1  ;;  %v208_v56 = vmax.f32 %v206_v53, 0.0 }
 0x19c   :  { %v205_v54 = vmul.f32 2.0, %v164_v51 }
 0x19e   :  { %v207_v55 = vsel %vm203_vm5, %v205_v54, 0.0 }
 0x19f   :  { %v209_v57 = vmax.f32 %v207_v55, 0.0 }
 0x1a1   :  { %v210_v58 = vpack.c.bf16 %v209_v57, %v208_v56 }
 0x1a3   :  { %333 = vmatmul.mubr.msk.bf16.vlgmr.msra.gmra.mxu1 %vm219_vm6, %v210_v58 }
 0x263   :  { %v261_v60 = vpop.f32.mrf.mxu1 }
 0x264   :  { %v262_v61 = vadd.f32 %v307_v59, %v261_v60 }
 0x265   :  { %v334_v62 = vpop.f32.mrf.mxu1 }
 0x266   :  { %v268_v63 = vmax.f32 %v262_v61, 0.0 }
 0x267   :  { %v264_v0 = vpop.f32.mrf.mxu1 }
 0x268   :  { %v265_v1 = vadd.f32 %v307_v59, %v264_v0  ;;  %v271_v2 = vsel %vm270_vm7, %v268_v63, -inf }
 0x269   :  { %272 = vmax.xlane.f32.xlu0 %v271_v2  ;;  %v335_v3 = vpop.f32.mrf.mxu1 }
 0x26a   :  { %v269_v4 = vmax.f32 %v265_v1, 0.0 }
 0x26c   :  { %v274_v5 = vsel %vm270_vm7, %v269_v4, -inf }
 0x26d   :  { %275 = vmax.xlane.f32.xlu0 %v274_v5 }
 0x2f2   :  { %v273_v6 = vpop.xlane.xlu0 %272 }
 0x2f3   :  { %v277_v7 = vsub.f32 %v268_v63, %v273_v6 }
 0x2f5   :  { %v279_v8 = vmul.f32 1.442695, %v277_v7 }
 0x2f6   :  { %v276_v9 = vpop.xlane.xlu0 %275 }
 0x2f7   :  { %342 = vpow2.f32 %v279_v8  ;;  %v278_v10 = vsub.f32 %v269_v4, %v276_v9 }
 0x2f9   :  { %v281_v11 = vmul.f32 1.442695, %v278_v10 }
 0x2fb   :  { %344 = vpow2.f32 %v281_v11 }
 0x304   :  { %v343_v12 = vpop.eup %342 }
 0x305   :  { %v283_v13 = vsel %vm270_vm7, %v343_v12, 0.0 }
 0x306   :  { %284 = vadd.xlane.f32.xlu1 %v283_v13 }
 0x308   :  { %v345_v14 = vpop.eup %344 }
 0x309   :  { %v286_v15 = vsel %vm270_vm7, %v345_v14, 0.0 }
 0x30a   :  { %287 = vadd.xlane.f32.xlu1 %v286_v15 }
 0x38f   :  { %v285_v16 = vpop.xlane.xlu1 %284 }
 0x390   :  { %346 = vrcp.f32 %v285_v16 }
 0x393   :  { %v288_v17 = vpop.xlane.xlu1 %287 }
 0x394   :  { %348 = vrcp.f32 %v288_v17 }
 0x39d   :  { %v347_v18 = vpop.eup %346 }
 0x39e   :  { %v290_v19 = vmul.f32 %v347_v18, %v343_v12 }
 0x3a0   :  { %293 = vst.msk [vmem:[%s447_s8] sm:$0xff] %vm270_vm7, %v290_v19 }
 0x3a1   :  { %v349_v20 = vpop.eup %348 }
 0x3a2   :  { %v292_v21 = vmul.f32 %v349_v20, %v345_v14 }
 0x3a4   :  { %294 = vst.msk [vmem:[%s447_s8 + $0x8] sm:$0xff] %vm270_vm7, %v292_v21 }

</bundles_post_ra>
